<compile_context>
chip_gen: v6e
topology: v6e:2x2x1
jax: 0.10.0
libtpu: 0.0.40
codegen_flags: <defaults>
</compile_context>

<pallas_src>
import functools

import jax
import jax.numpy as jnp
from jax.experimental import pallas as pl
from jax.experimental.pallas import tpu as pltpu


MARGIN = 128  # lane-aligned zero margin around the flat activation (>= Wp + 1)


def lcnn_fused_kernel(x_ref, w1_ref, b1_ref, w2_ref, b2_ref, mask_ref,
                      o_ref, apad_ref, *, wp, lp, margin):
    """Two fused 3x3 'same' conv + ReLU layers on the flattened padded grid.

    x_ref   : (Cin,  Ltot)  layer-1 input: zero-padded spatial grid flattened
                            into lanes, with `margin` zero lanes on each side
                            (Ltot = lp + 2*margin, lp = N*Hp*Wp)
    w*_ref  : (Cout, 9*C)   per-layer weight matrix (one K = 9*C matmul/layer)
    b*_ref  : (Cout, 1)     bias, already column-shaped for lane broadcast
    mask_ref: (1, lp)       1.0 at interior pixels of the padded grid, 0.0 on
                            the padding border
    o_ref   : (Cout, lp)    layer-2 output on the padded grid (border entries
                            are garbage and are stripped by the wrapper)
    apad_ref: (Cout, Ltot)  VMEM scratch: layer-1 activation re-embedded with
                            zero margins (this IS layer-2's 'same' padding)
    """

    def conv3x3_relu(a_ref, wm, bias):
        # The 9 taps of a 3x3 conv are constant lane shifts of the flat padded
        # grid.  Concatenate them into one (9*C, lp) slab -> single MXU matmul
        # with a lane-dense (Cout, lp) result.
        taps = []
        for kh in range(3):
            for kw in range(3):
                start = margin + (kh - 1) * wp + (kw - 1)
                taps.append(a_ref[:, start:start + lp])
        slab = jnp.concatenate(taps, axis=0)                      # (9*C, lp)
        y = jnp.dot(wm, slab, preferred_element_type=jnp.float32)  # (Cout, lp)
        return jnp.maximum(y + bias, 0.0)

    # ---- layer 1 ----
    a1 = conv3x3_relu(x_ref, w1_ref[...], b1_ref[...])
    # Zero the border pixels of the padded grid so they act as layer-2's
    # zero padding (border results are wrap-around garbage otherwise).
    a1 = a1 * mask_ref[...]

    # Re-embed the activation with zero margins entirely in VMEM.
    apad_ref[...] = jnp.zeros(apad_ref.shape, apad_ref.dtype)
    apad_ref[:, margin:margin + lp] = a1

    # ---- layer 2 ----
    o_ref[...] = conv3x3_relu(apad_ref, w2_ref[...],
                              b2_ref[...]).astype(o_ref.dtype)


def lcnn_forward(x_nchw, params):
    """Forward pass equivalent to LCNN.forward (PyTorch NCHW in/out)."""
    (w1, b1), (w2, b2) = params
    N, Cin, H, W = x_nchw.shape
    Cout = w1.shape[-1]
    assert w1.shape[:2] == (3, 3) and w2.shape[:2] == (3, 3)
    Hp, Wp = H + 2, W + 2
    Lp = N * Hp * Wp
    margin = MARGIN
    assert Wp + 1 <= margin, "spatial width too large for fixed lane margin"
    Ltot = Lp + 2 * margin

    # ---------- tiny XLA-side layout prep (a few KB, fuses into one op) ----
    # Input: NCHW -> channel-major padded grid -> flat lanes (+ zero margins).
    xc = jnp.transpose(x_nchw, (1, 0, 2, 3))                     # (Cin,N,H,W)
    xp = jnp.pad(xc, ((0, 0), (0, 0), (1, 1), (1, 1)))           # (Cin,N,Hp,Wp)
    xflat = jnp.pad(xp.reshape(Cin, Lp), ((0, 0), (margin, margin)))

    # Weights: HWIO -> (Cout, 9*C) so each conv is one K=9*C matmul;
    # column order (kh, kw, cin) matches the kernel's slab row order.
    wm1 = w1.reshape(9 * Cin, Cout).T
    wm2 = w2.reshape(9 * Cout, Cout).T
    b1c = b1.reshape(Cout, 1)
    b2c = b2.reshape(Cout, 1)

    # Interior mask of the padded grid (1 inside, 0 on the padding border).
    mask = jnp.pad(jnp.ones((N, H, W), jnp.float32),
                   ((0, 0), (1, 1), (1, 1))).reshape(1, Lp)

    kernel = functools.partial(lcnn_fused_kernel, wp=Wp, lp=Lp, margin=margin)
    ypad = pl.pallas_call(
        kernel,
        out_shape=jax.ShapeDtypeStruct((Cout, Lp), jnp.float32),
        grid=(1,),
        in_specs=[
            pl.BlockSpec((Cin, Ltot), lambda i: (0, 0)),
            pl.BlockSpec((Cout, 9 * Cin), lambda i: (0, 0)),
            pl.BlockSpec((Cout, 1), lambda i: (0, 0)),
            pl.BlockSpec((Cout, 9 * Cout), lambda i: (0, 0)),
            pl.BlockSpec((Cout, 1), lambda i: (0, 0)),
            pl.BlockSpec((1, Lp), lambda i: (0, 0)),
        ],
        out_specs=pl.BlockSpec((Cout, Lp), lambda i: (0, 0)),
        scratch_shapes=[pltpu.VMEM((Cout, Ltot), jnp.float32)],
        compiler_params=pltpu.CompilerParams(
            dimension_semantics=("arbitrary",)),
    )(xflat, wm1, b1c, wm2, b2c, mask)

    # Strip the padded-grid border and restore NCHW.
    out = ypad.reshape(Cout, N, Hp, Wp)[:, :, 1:H + 1, 1:W + 1]
    return jnp.transpose(out, (1, 0, 2, 3))


def init_params(key, cin, cout, ksize=3):
    """Deterministic init matching PyTorch Conv2d's default uniform bounds."""
    def one_layer(k, in_c, out_c):
        kw_key, kb_key = jax.random.split(k)
        fan_in = in_c * ksize * ksize
        bound = 1.0 / jnp.sqrt(fan_in)
        # HWIO layout (kh, kw, Cin, Cout)
        w = jax.random.uniform(kw_key, (ksize, ksize, in_c, out_c),
                               jnp.float32, -bound, bound)
        b = jax.random.uniform(kb_key, (out_c,), jnp.float32, -bound, bound)
        return w, b

    k1, k2 = jax.random.split(key)
    return (one_layer(k1, cin, cout), one_layer(k2, cout, cout))


def lcnn_reference(x_nchw, params):
    """Pure-JAX reference (lax.conv) for correctness checking."""
    (w1, b1), (w2, b2) = params
    x = jnp.transpose(x_nchw, (0, 2, 3, 1))
    for w, b in ((w1, b1), (w2, b2)):
        y = jax.lax.conv_general_dilated(
            x, w, window_strides=(1, 1), padding="SAME",
            dimension_numbers=("NHWC", "HWIO", "NHWC"),
            precision=jax.lax.Precision.HIGHEST)
        x = jnp.maximum(y + b, 0.0)
    return jnp.transpose(x, (0, 3, 1, 2))


if __name__ == "__main__":
    key = jax.random.PRNGKey(0)
    k_x, k_p = jax.random.split(key)

    # Small shapes: batch=2, input_channels=4, output_channels=8, spatial=16.
    N, Cin, Cout, H, W = 2, 4, 8, 16, 16
    x = jax.random.normal(k_x, (N, Cin, H, W), jnp.float32)   # NCHW like PyTorch
    params = init_params(k_p, Cin, Cout)

    out = jax.block_until_ready(jax.jit(lcnn_forward)(x, params))
    ref = jax.block_until_ready(lcnn_reference(x, params))

    assert out.shape == (N, Cout, H, W), out.shape
    err = float(jnp.max(jnp.abs(out - ref)))
    assert jnp.allclose(out, ref, atol=1e-5, rtol=1e-5), f"mismatch vs reference: {err}"

    print("KERNEL_OK")
</pallas_src>

<mosaic_0001>
module attributes {stable_mosaic.version = 11 : i64} {
  func.func @lcnn_fused_kernel(%arg0: i32, %arg1: memref<4x904xf32, #tpu.memory_space<vmem>>, %arg2: memref<8x36xf32, #tpu.memory_space<vmem>>, %arg3: memref<8x1xf32, #tpu.memory_space<vmem>>, %arg4: memref<8x72xf32, #tpu.memory_space<vmem>>, %arg5: memref<8x1xf32, #tpu.memory_space<vmem>>, %arg6: memref<1x648xf32, #tpu.memory_space<vmem>>, %arg7: memref<8x648xf32, #tpu.memory_space<vmem>>, %arg8: memref<8x904xf32, #tpu.memory_space<vmem>>) attributes {dimension_semantics = [#tpu.dimension_semantics<arbitrary>], iteration_bounds = array<i64: 1>, scalar_prefetch = 0 : i64, scratch_operands = 1 : i64, tpu.core_type = #tpu.core_type<tc>, window_params = [{pipeline_mode = #tpu.pipeline_mode<synchronous>, transform_indices = @transform_0, window_bounds = array<i64: 4, 904>}, {pipeline_mode = #tpu.pipeline_mode<synchronous>, transform_indices = @transform_1, window_bounds = array<i64: 8, 36>}, {pipeline_mode = #tpu.pipeline_mode<synchronous>, transform_indices = @transform_2, window_bounds = array<i64: 8, 1>}, {pipeline_mode = #tpu.pipeline_mode<synchronous>, transform_indices = @transform_3, window_bounds = array<i64: 8, 72>}, {pipeline_mode = #tpu.pipeline_mode<synchronous>, transform_indices = @transform_4, window_bounds = array<i64: 8, 1>}, {pipeline_mode = #tpu.pipeline_mode<synchronous>, transform_indices = @transform_5, window_bounds = array<i64: 1, 648>}, {pipeline_mode = #tpu.pipeline_mode<synchronous>, transform_indices = @transform_6, window_bounds = array<i64: 8, 648>}]} {
    %c0 = arith.constant 0 : index
    %c0_0 = arith.constant 0 : index
    %0 = vector.load %arg2[%c0, %c0_0] : memref<8x36xf32, #tpu.memory_space<vmem>>, vector<8x36xf32>
    %c0_1 = arith.constant 0 : index
    %c0_2 = arith.constant 0 : index
    %1 = vector.load %arg3[%c0_1, %c0_2] : memref<8x1xf32, #tpu.memory_space<vmem>>, vector<8x1xf32>
    %c0_3 = arith.constant 0 : index
    %c109 = arith.constant 109 : index
    %2 = vector.load %arg1[%c0_3, %c109] : memref<4x904xf32, #tpu.memory_space<vmem>>, vector<4x648xf32>
    %c0_4 = arith.constant 0 : index
    %c110 = arith.constant 110 : index
    %3 = vector.load %arg1[%c0_4, %c110] : memref<4x904xf32, #tpu.memory_space<vmem>>, vector<4x648xf32>
    %c0_5 = arith.constant 0 : index
    %c111 = arith.constant 111 : index
    %4 = vector.load %arg1[%c0_5, %c111] : memref<4x904xf32, #tpu.memory_space<vmem>>, vector<4x648xf32>
    %c0_6 = arith.constant 0 : index
    %c127 = arith.constant 127 : index
    %5 = vector.load %arg1[%c0_6, %c127] : memref<4x904xf32, #tpu.memory_space<vmem>>, vector<4x648xf32>
    %c0_7 = arith.constant 0 : index
    %c128 = arith.constant 128 : index
    %6 = vector.load %arg1[%c0_7, %c128] : memref<4x904xf32, #tpu.memory_space<vmem>>, vector<4x648xf32>
    %c0_8 = arith.constant 0 : index
    %c129 = arith.constant 129 : index
    %7 = vector.load %arg1[%c0_8, %c129] : memref<4x904xf32, #tpu.memory_space<vmem>>, vector<4x648xf32>
    %c0_9 = arith.constant 0 : index
    %c145 = arith.constant 145 : index
    %8 = vector.load %arg1[%c0_9, %c145] : memref<4x904xf32, #tpu.memory_space<vmem>>, vector<4x648xf32>
    %c0_10 = arith.constant 0 : index
    %c146 = arith.constant 146 : index
    %9 = vector.load %arg1[%c0_10, %c146] : memref<4x904xf32, #tpu.memory_space<vmem>>, vector<4x648xf32>
    %c0_11 = arith.constant 0 : index
    %c147 = arith.constant 147 : index
    %10 = vector.load %arg1[%c0_11, %c147] : memref<4x904xf32, #tpu.memory_space<vmem>>, vector<4x648xf32>
    %11 = tpu.concatenate %2, %3, %4, %5, %6, %7, %8, %9, %10 in 0 : vector<4x648xf32>, vector<4x648xf32>, vector<4x648xf32>, vector<4x648xf32>, vector<4x648xf32>, vector<4x648xf32>, vector<4x648xf32>, vector<4x648xf32>, vector<4x648xf32> -> vector<36x648xf32>
    %cst = arith.constant dense<0.000000e+00> : vector<8x648xf32>
    %12 = tpu.matmul %0, %11, %cst {dimension_numbers = #tpu.dot_dimension_numbers<[1], [0], [0], [1], [0, 0, 1, 1], [], []>} : vector<8x36xf32>, vector<36x648xf32>, vector<8x648xf32> -> vector<8x648xf32>
    %13 = vector.broadcast %1 : vector<8x1xf32> to vector<8x648xf32>
    %14 = arith.addf %12, %13 : vector<8x648xf32>
    %cst_12 = arith.constant 0.000000e+00 : f32
    %15 = vector.broadcast %cst_12 : f32 to vector<8x648xf32>
    %16 = arith.maximumf %14, %15 : vector<8x648xf32>
    %c0_13 = arith.constant 0 : index
    %c0_14 = arith.constant 0 : index
    %17 = vector.load %arg6[%c0_13, %c0_14] : memref<1x648xf32, #tpu.memory_space<vmem>>, vector<1x648xf32>
    %18 = vector.broadcast %17 : vector<1x648xf32> to vector<8x648xf32>
    %19 = arith.mulf %16, %18 : vector<8x648xf32>
    %cst_15 = arith.constant 0.000000e+00 : f32
    %20 = vector.broadcast %cst_15 : f32 to vector<8x904xf32>
    %c0_16 = arith.constant 0 : index
    %c0_17 = arith.constant 0 : index
    %21 = vector.load %arg8[%c0_16, %c0_17] : memref<8x904xf32, #tpu.memory_space<vmem>>, vector<8x904xf32>
    tpu.vector_store %arg8[%c0_16, %c0_17], %20 {strides = array<i32>} : memref<8x904xf32, #tpu.memory_space<vmem>>, vector<8x904xf32>,
    %c0_18 = arith.constant 0 : index
    %c128_19 = arith.constant 128 : index
    %22 = vector.load %arg8[%c0_18, %c128_19] : memref<8x904xf32, #tpu.memory_space<vmem>>, vector<8x648xf32>
    tpu.vector_store %arg8[%c0_18, %c128_19], %19 {strides = array<i32>} : memref<8x904xf32, #tpu.memory_space<vmem>>, vector<8x648xf32>,
    %c0_20 = arith.constant 0 : index
    %c0_21 = arith.constant 0 : index
    %23 = vector.load %arg4[%c0_20, %c0_21] : memref<8x72xf32, #tpu.memory_space<vmem>>, vector<8x72xf32>
    %c0_22 = arith.constant 0 : index
    %c0_23 = arith.constant 0 : index
    %24 = vector.load %arg5[%c0_22, %c0_23] : memref<8x1xf32, #tpu.memory_space<vmem>>, vector<8x1xf32>
    %c0_24 = arith.constant 0 : index
    %c109_25 = arith.constant 109 : index
    %25 = vector.load %arg8[%c0_24, %c109_25] : memref<8x904xf32, #tpu.memory_space<vmem>>, vector<8x648xf32>
    %c0_26 = arith.constant 0 : index
    %c110_27 = arith.constant 110 : index
    %26 = vector.load %arg8[%c0_26, %c110_27] : memref<8x904xf32, #tpu.memory_space<vmem>>, vector<8x648xf32>
    %c0_28 = arith.constant 0 : index
    %c111_29 = arith.constant 111 : index
    %27 = vector.load %arg8[%c0_28, %c111_29] : memref<8x904xf32, #tpu.memory_space<vmem>>, vector<8x648xf32>
    %c0_30 = arith.constant 0 : index
    %c127_31 = arith.constant 127 : index
    %28 = vector.load %arg8[%c0_30, %c127_31] : memref<8x904xf32, #tpu.memory_space<vmem>>, vector<8x648xf32>
    %c0_32 = arith.constant 0 : index
    %c128_33 = arith.constant 128 : index
    %29 = vector.load %arg8[%c0_32, %c128_33] : memref<8x904xf32, #tpu.memory_space<vmem>>, vector<8x648xf32>
    %c0_34 = arith.constant 0 : index
    %c129_35 = arith.constant 129 : index
    %30 = vector.load %arg8[%c0_34, %c129_35] : memref<8x904xf32, #tpu.memory_space<vmem>>, vector<8x648xf32>
    %c0_36 = arith.constant 0 : index
    %c145_37 = arith.constant 145 : index
    %31 = vector.load %arg8[%c0_36, %c145_37] : memref<8x904xf32, #tpu.memory_space<vmem>>, vector<8x648xf32>
    %c0_38 = arith.constant 0 : index
    %c146_39 = arith.constant 146 : index
    %32 = vector.load %arg8[%c0_38, %c146_39] : memref<8x904xf32, #tpu.memory_space<vmem>>, vector<8x648xf32>
    %c0_40 = arith.constant 0 : index
    %c147_41 = arith.constant 147 : index
    %33 = vector.load %arg8[%c0_40, %c147_41] : memref<8x904xf32, #tpu.memory_space<vmem>>, vector<8x648xf32>
    %34 = tpu.concatenate %25, %26, %27, %28, %29, %30, %31, %32, %33 in 0 : vector<8x648xf32>, vector<8x648xf32>, vector<8x648xf32>, vector<8x648xf32>, vector<8x648xf32>, vector<8x648xf32>, vector<8x648xf32>, vector<8x648xf32>, vector<8x648xf32> -> vector<72x648xf32>
    %cst_42 = arith.constant dense<0.000000e+00> : vector<8x648xf32>
    %35 = tpu.matmul %23, %34, %cst_42 {dimension_numbers = #tpu.dot_dimension_numbers<[1], [0], [0], [1], [0, 0, 1, 1], [], []>} : vector<8x72xf32>, vector<72x648xf32>, vector<8x648xf32> -> vector<8x648xf32>
    %36 = vector.broadcast %24 : vector<8x1xf32> to vector<8x648xf32>
    %37 = arith.addf %35, %36 : vector<8x648xf32>
    %cst_43 = arith.constant 0.000000e+00 : f32
    %38 = vector.broadcast %cst_43 : f32 to vector<8x648xf32>
    %39 = arith.maximumf %37, %38 : vector<8x648xf32>
    %c0_44 = arith.constant 0 : index
    %c0_45 = arith.constant 0 : index
    %40 = vector.load %arg7[%c0_44, %c0_45] : memref<8x648xf32, #tpu.memory_space<vmem>>, vector<8x648xf32>
    tpu.vector_store %arg7[%c0_44, %c0_45], %39 {strides = array<i32>} : memref<8x648xf32, #tpu.memory_space<vmem>>, vector<8x648xf32>,
    return
  }
  func.func @transform_0(%arg0: i32) -> (i32, i32) {
    %c0_i32 = arith.constant 0 : i32
    %c0_i32_0 = arith.constant 0 : i32
    %c0_i32_1 = arith.constant 0 : i32
    return %c0_i32, %c0_i32_0 : i32, i32
  }
  func.func @transform_1(%arg0: i32) -> (i32, i32) {
    %c0_i32 = arith.constant 0 : i32
    %c0_i32_0 = arith.constant 0 : i32
    %c0_i32_1 = arith.constant 0 : i32
    return %c0_i32, %c0_i32_0 : i32, i32
  }
  func.func @transform_2(%arg0: i32) -> (i32, i32) {
    %c0_i32 = arith.constant 0 : i32
    %c0_i32_0 = arith.constant 0 : i32
    %c0_i32_1 = arith.constant 0 : i32
    return %c0_i32, %c0_i32_0 : i32, i32
  }
  func.func @transform_3(%arg0: i32) -> (i32, i32) {
    %c0_i32 = arith.constant 0 : i32
    %c0_i32_0 = arith.constant 0 : i32
    %c0_i32_1 = arith.constant 0 : i32
    return %c0_i32, %c0_i32_0 : i32, i32
  }
  func.func @transform_4(%arg0: i32) -> (i32, i32) {
    %c0_i32 = arith.constant 0 : i32
    %c0_i32_0 = arith.constant 0 : i32
    %c0_i32_1 = arith.constant 0 : i32
    return %c0_i32, %c0_i32_0 : i32, i32
  }
  func.func @transform_5(%arg0: i32) -> (i32, i32) {
    %c0_i32 = arith.constant 0 : i32
    %c0_i32_0 = arith.constant 0 : i32
    %c0_i32_1 = arith.constant 0 : i32
    return %c0_i32, %c0_i32_0 : i32, i32
  }
  func.func @transform_6(%arg0: i32) -> (i32, i32) {
    %c0_i32 = arith.constant 0 : i32
    %c0_i32_0 = arith.constant 0 : i32
    %c0_i32_1 = arith.constant 0 : i32
    return %c0_i32, %c0_i32_0 : i32, i32
  }
}

</mosaic_0001>

<bundles_post_ra>
// kernel: lcnn_forward.1
= control target key start
LH: loop header
LB: loop body
LE: loop exit
PB: predicated region body
PF: predicated region fallthrough
CT: control target
= control target key end

     0   :  { %s1334_s25 = smov 90   ;;  %s1335_s26 = smov 92   ;;  %vm238_vm0 = vcmask 736256   ;;  %vm244_vm1 = vcmask 1043456   ;;  %vm214_vm2 = vcmask 744448   ;;  %vm190_vm3 = vcmask 752640   ;;  %s2000_s0 = inlined_call_operand.vmem [shape: f32[4,904], index: 0, kind: input, shape index: {}]   ;;  %s2001_s2 = inlined_call_operand.vmem [shape: f32[8,1], index: 2, kind: input, shape index: {}]   ;;  %s2002_s1 = inlined_call_operand.vmem [shape: f32[8,36], index: 1, kind: input, shape index: {}]   ;;  %s2003_s5 = inlined_call_operand.vmem [shape: f32[1,648], index: 5, kind: input, shape index: {}]   ;;  %s2004_s4 = inlined_call_operand.vmem [shape: f32[8,1], index: 4, kind: input, shape index: {}]   ;;  %s2005_s3 = inlined_call_operand.vmem [shape: f32[8,72], index: 3, kind: input, shape index: {}]   ;;  %s2006_s6 = inlined_call_operand.vmem [shape: f32[8,648], index: 6, kind: output, shape index: {}]  }
   0x1   :  { %v30_v0 = vld [vmem:[%s2000_s0 + $0xc] sm:$0xff]  ;;  %v29_v1 = vld [vmem:[%s2000_s0 + $0x4] sm:$0xff]  ;;  %s1336_s27 = smov 91   ;;  %v31_v6 = vld [vmem:[%s2000_s0 + $0x14] sm:$0xff]  ;;  %s1337_s30 = smov 109   ;;  %vm139_vm4 = vcmask 891904  }
   0x2   :  { %230 = vrot.lane.b32.xlu1 %v30_v0, %s1334_s25  ;;  %226 = vrot.lane.b32.xlu0 %v29_v1, %s1334_s25  ;;  %v124_v2 = vcombine.high %v29_v1, %v29_v1  ;;  %v151_v3 = vcombine.low %v29_v1, %v29_v1  ;;  %v125_v4 = vcombine.high %v30_v0, %v30_v0  ;;  %s1338_s7 = smov 108   ;;  %v1410_v7 = vld [vmem:[%s2000_s0] sm:$0xff]  ;;  %v1421_v10 = vld [vmem:[%s2000_s0 + $0x8] sm:$0xff]  ;;  %s1339_s12 = smov 126   ;;  %vm166_vm5 = vcmask 883712  }
   0x3   :  { %v152_v5 = vcombine.low %v30_v0, %v30_v0  ;;  %v153_v8 = vcombine.low %v31_v6, %v31_v6  ;;  %v1416_v9 = vcombine.high %v1410_v7, %v1410_v7  ;;  %v1428_v11 = vcombine.high %v1421_v10, %v1421_v10  ;;  %s1340_s13 = smov 110   ;;  %s1341_s14 = smov 127   ;;  %v1455_v14 = vld [vmem:[%s2000_s0 + $0x10] sm:$0xff]  ;;  %v1333_v18 = vld [vmem:[%s2000_s0 + $0x18] ss:$0 sps:$4 sm:$0xff]  }
   0x4   :  { %v42_v12 = vcombine.low %v1421_v10, %v1421_v10  ;;  %v41_v13 = vcombine.low %v1410_v7, %v1410_v7  ;;  %v1462_v15 = vcombine.high %v1455_v14, %v1455_v14  ;;  %v43_v16 = vcombine.low %v1455_v14, %v1455_v14  ;;  %s1342_s19 = smov 19  }
   0x5   :  { %v126_v17 = vcombine.high %v31_v6, %v31_v6  ;;  %vm80_vm6 = vcmask 1031168   ;;  %vm108_vm7 = vcmask 900096   ;;  %vm56_vm8 = vcmask 1039360  }
   0x6   :  { %178 = vrot.lane.b32.xlu1 %v29_v1, %s1335_s26  ;;  %228 = vrot.lane.b32.xlu0 %v124_v2, %s1334_s25  ;;  %vm358_vm9 = vcmask 154624   ;;  %vm408_vm10 = vcmask 293888   ;;  %vm688_vm11 = vcmask 64512   ;;  %vm1063_vm12 = vcmask 588800  }
   0xa   :  { %182 = vrot.lane.b32.xlu1 %v30_v0, %s1335_s26  ;;  %180 = vrot.lane.b32.xlu0 %v124_v2, %s1335_s26 }
   0xe   :  { %204 = vrot.lane.b32.xlu1 %v29_v1, %s1336_s27  ;;  %202 = vrot.lane.b32.xlu0 %v151_v3, %s1336_s27 }
  0x12   :  { %232 = vrot.lane.b32.xlu1 %v125_v4, %s1334_s25  ;;  %206 = vrot.lane.b32.xlu0 %v152_v5, %s1336_s27 }
  0x16   :  { %127 = vrot.lane.b32.xlu1 %v29_v1, %s1337_s30  ;;  %234 = vrot.lane.b32.xlu0 %v31_v6, %s1334_s25 }
  0x1a   :  { %131 = vrot.lane.b32.xlu1 %v30_v0, %s1337_s30  ;;  %129 = vrot.lane.b32.xlu0 %v124_v2, %s1337_s30 }
  0x1e   :  { %156 = vrot.lane.b32.xlu1 %v29_v1, %s1338_s7  ;;  %154 = vrot.lane.b32.xlu0 %v151_v3, %s1338_s7 }
  0x22   :  { %184 = vrot.lane.b32.xlu1 %v125_v4, %s1335_s26  ;;  %158 = vrot.lane.b32.xlu0 %v152_v5, %s1338_s7 }
  0x26   :  { %208 = vrot.lane.b32.xlu1 %v30_v0, %s1336_s27  ;;  %186 = vrot.lane.b32.xlu0 %v31_v6, %s1335_s26 }
  0x2a   :  { %210 = vrot.lane.b32.xlu0 %v153_v8, %s1336_s27  ;;  %70 = vrot.lane.b32.xlu1 %v1416_v9, %s1339_s12 }
  0x2e   :  { %72 = vrot.lane.b32.xlu0 %v1421_v10, %s1339_s12  ;;  %74 = vrot.lane.b32.xlu1 %v1428_v11, %s1339_s12 }
  0x32   :  { %96 = vrot.lane.b32.xlu0 %v1410_v7, %s1340_s13  ;;  %98 = vrot.lane.b32.xlu1 %v42_v12, %s1340_s13 }
  0x36   :  { %100 = vrot.lane.b32.xlu0 %v1421_v10, %s1340_s13  ;;  %133 = vrot.lane.b32.xlu1 %v125_v4, %s1337_s30 }
  0x3a   :  { %135 = vrot.lane.b32.xlu0 %v31_v6, %s1337_s30  ;;  %160 = vrot.lane.b32.xlu1 %v30_v0, %s1338_s7 }
  0x3e   :  { %162 = vrot.lane.b32.xlu0 %v153_v8, %s1338_s7  ;;  %68 = vrot.lane.b32.xlu1 %v1410_v7, %s1339_s12 }
  0x42   :  { %94 = vrot.lane.b32.xlu0 %v41_v13, %s1340_s13  ;;  %46 = vrot.lane.b32.xlu1 %v1410_v7, %s1341_s14 }
  0x46   :  { %48 = vrot.lane.b32.xlu0 %v42_v12, %s1341_s14  ;;  %50 = vrot.lane.b32.xlu1 %v1421_v10, %s1341_s14 }
  0x4a   :  { %76 = vrot.lane.b32.xlu0 %v1455_v14, %s1339_s12  ;;  %78 = vrot.lane.b32.xlu1 %v1462_v15, %s1339_s12 }
  0x4e   :  { %102 = vrot.lane.b32.xlu0 %v43_v16, %s1340_s13  ;;  %104 = vrot.lane.b32.xlu1 %v1455_v14, %s1340_s13 }
  0x52   :  { %44 = vrot.lane.b32.xlu0 %v41_v13, %s1341_s14  ;;  %52 = vrot.lane.b32.xlu1 %v43_v16, %s1341_s14 }
  0x56   :  { %54 = vrot.lane.b32.xlu0 %v1455_v14, %s1341_s14  ;;  %236 = vrot.lane.b32.xlu1 %v126_v17, %s1334_s25 }
  0x5a   :  { %188 = vrot.lane.b32.xlu0 %v126_v17, %s1335_s26  ;;  %212 = vrot.lane.b32.xlu1 %v31_v6, %s1336_s27 }
  0x5e   :  { %137 = vrot.lane.b32.xlu0 %v126_v17, %s1337_s30  ;;  %164 = vrot.lane.b32.xlu1 %v31_v6, %s1338_s7 }
  0x62   :  { %106 = vrot.lane.b32.xlu0 %v1333_v18, %s1340_s13 }
  0x74   :  { %v231_v19 = vpop.permute.xlu1 %230  ;;  %v227_v20 = vpop.permute.xlu0 %226 }
  0x75   :  { %346 = vrot.lane.b32.xlu1 %v227_v20, %s1342_s19 }
  0x78   :  { %v179_v21 = vpop.permute.xlu1 %178  ;;  %v229_v22 = vpop.permute.xlu0 %228 }
  0x79   :  { %v240_v23 = vsel %vm238_vm0, %v229_v22, %v231_v19  ;;  %v239_v24 = vsel %vm238_vm0, %v227_v20, %v229_v22 }
  0x7a   :  { %350 = vrot.lane.b32.xlu0 %v240_v23, %s1342_s19  ;;  %348 = vrot.lane.b32.xlu1 %v239_v24, %s1342_s19 }
  0x7c   :  { %v183_v25 = vpop.permute.xlu1 %182  ;;  %v181_v26 = vpop.permute.xlu0 %180 }
  0x7d   :  { %v191_v37 = vsel %vm190_vm3, %v179_v21, %v181_v26  ;;  %v192_v45 = vsel %vm190_vm3, %v181_v26, %v183_v25 }
  0x80   :  { %v205_v27 = vpop.permute.xlu1 %204  ;;  %v203_v28 = vpop.permute.xlu0 %202 }
  0x81   :  { %v263_v34 = vsel %vm244_vm1, %v179_v21, %v203_v28  ;;  %v215_v36 = vsel %vm214_vm2, %v203_v28, %v205_v27 }
  0x82   :  { %v264_v40 = vsel %vm244_vm1, %v191_v37, %v215_v36 }
  0x84   :  { %v233_v29 = vpop.permute.xlu1 %232  ;;  %v207_v30 = vpop.permute.xlu0 %206 }
  0x85   :  { %v241_v31 = vsel %vm238_vm0, %v231_v19, %v233_v29  ;;  %v216_v44 = vsel %vm214_vm2, %v205_v27, %v207_v30 }
  0x86   :  { %352 = vrot.lane.b32.xlu0 %v241_v31, %s1342_s19  ;;  %v265_v50 = vsel %vm244_vm1, %v192_v45, %v216_v44 }
  0x88   :  { %v128_v32 = vpop.permute.xlu1 %127  ;;  %v1493_v33 = vpop.permute.xlu0 %234 }
  0x89   :  { %v242_v35 = vsel %vm238_vm0, %v233_v29, %v1493_v33 }
  0x8a   :  { %334 = vrot.lane.b32.xlu0 %v263_v34, %s1342_s19  ;;  %354 = vrot.lane.b32.xlu1 %v242_v35, %s1342_s19 }
  0x8c   :  { %v132_v38 = vpop.permute.xlu1 %131  ;;  %v130_v39 = vpop.permute.xlu0 %129 }
  0x8d   :  { %v141_v48 = vsel %vm139_vm4, %v130_v39, %v132_v38  ;;  %v140_v53 = vsel %vm139_vm4, %v128_v32, %v130_v39 }
  0x8e   :  { %336 = vrot.lane.b32.xlu0 %v264_v40, %s1342_s19 }
  0x90   :  { %v157_v41 = vpop.permute.xlu1 %156  ;;  %v155_v42 = vpop.permute.xlu0 %154 }
  0x91   :  { %v257_v43 = vsel %vm244_vm1, %v128_v32, %v155_v42  ;;  %v167_v51 = vsel %vm166_vm5, %v155_v42, %v157_v41 }
  0x92   :  { %322 = vrot.lane.b32.xlu1 %v257_v43, %s1342_s19  ;;  %v258_v56 = vsel %vm244_vm1, %v140_v53, %v167_v51 }
  0x94   :  { %v185_v46 = vpop.permute.xlu1 %184  ;;  %v159_v47 = vpop.permute.xlu0 %158 }
  0x95   :  { %v168_v49 = vsel %vm166_vm5, %v157_v41, %v159_v47  ;;  %v193_v58 = vsel %vm190_vm3, %v183_v25, %v185_v46  ;;  %v1343_v41 = vmov 0.0  }
  0x96   :  { %338 = vrot.lane.b32.xlu1 %v265_v50, %s1342_s19  ;;  %v259_v52 = vsel %vm244_vm1, %v141_v48, %v168_v49  ;;  %687 = vst [vmem:[#allocation2 + $0x30] sm:$0xff] %v1343_v41  ;;  %488 = vmatprep.mubr.f32.mxu0 %v1343_v41 }
  0x97   :  { %326 = vrot.lane.b32.xlu0 %v259_v52, %s1342_s19  ;;  %559 = vmatprep.mubr.f32.mxu1 %v1343_v41 }
  0x98   :  { %v209_v54 = vpop.permute.xlu1 %208  ;;  %v1516_v55 = vpop.permute.xlu0 %186 }
  0x99   :  { %v217_v57 = vsel %vm214_vm2, %v207_v30, %v209_v54  ;;  %v194_v61 = vsel %vm190_vm3, %v185_v46, %v1516_v55 }
  0x9a   :  { %324 = vrot.lane.b32.xlu1 %v258_v56, %s1342_s19  ;;  %v266_v63 = vsel %vm244_vm1, %v193_v58, %v217_v57 }
  0x9c   :  { %v1522_v59 = vpop.permute.xlu0 %210  ;;  %v71_v60 = vpop.permute.xlu1 %70 }
  0x9d   :  { %v218_v62 = vsel %vm214_vm2, %v209_v54, %v1522_v59 }
  0x9e   :  { %340 = vrot.lane.b32.xlu1 %v266_v63, %s1342_s19  ;;  %v267_v0 = vsel %vm244_vm1, %v194_v61, %v218_v62 }
  0x9f   :  { %342 = vrot.lane.b32.xlu0 %v267_v0, %s1342_s19 }
  0xa0   :  { %v73_v1 = vpop.permute.xlu0 %72  ;;  %v75_v2 = vpop.permute.xlu1 %74 }
  0xa1   :  { %v82_v5 = vsel %vm80_vm6, %v71_v60, %v73_v1  ;;  %v83_v16 = vsel %vm80_vm6, %v73_v1, %v75_v2 }
  0xa4   :  { %v97_v3 = vpop.permute.xlu0 %96  ;;  %v99_v4 = vpop.permute.xlu1 %98 }
  0xa5   :  { %v110_v6 = vsel %vm108_vm7, %v97_v3, %v99_v4 }
  0xa6   :  { %v252_v8 = vsel %vm244_vm1, %v82_v5, %v110_v6 }
  0xa7   :  { %312 = vrot.lane.b32.xlu0 %v252_v8, %s1342_s19 }
  0xa8   :  { %v101_v12 = vpop.permute.xlu0 %100  ;;  %v134_v13 = vpop.permute.xlu1 %133 }
  0xa9   :  { %v111_v17 = vsel %vm108_vm7, %v99_v4, %v101_v12  ;;  %v142_v21 = vsel %vm139_vm4, %v132_v38, %v134_v13 }
  0xaa   :  { %v253_v18 = vsel %vm244_vm1, %v83_v16, %v111_v17 }
  0xab   :  { %314 = vrot.lane.b32.xlu1 %v253_v18, %s1342_s19 }
  0xac   :  { %v1540_v19 = vpop.permute.xlu0 %135  ;;  %v161_v20 = vpop.permute.xlu1 %160 }
  0xad   :  { %v169_v22 = vsel %vm166_vm5, %v159_v47, %v161_v20  ;;  %v143_v26 = vsel %vm139_vm4, %v134_v13, %v1540_v19 }
  0xae   :  { %v260_v23 = vsel %vm244_vm1, %v142_v21, %v169_v22 }
  0xaf   :  { %328 = vrot.lane.b32.xlu0 %v260_v23, %s1342_s19 }
  0xb0   :  { %v1546_v24 = vpop.permute.xlu0 %162  ;;  %v69_v25 = vpop.permute.xlu1 %68 }
  0xb1   :  { %v170_v27 = vsel %vm166_vm5, %v161_v20, %v1546_v24  ;;  %v81_v31 = vsel %vm80_vm6, %v69_v25, %v71_v60 }
  0xb2   :  { %v261_v28 = vsel %vm244_vm1, %v143_v26, %v170_v27 }
  0xb3   :  { %330 = vrot.lane.b32.xlu1 %v261_v28, %s1342_s19 }
  0xb4   :  { %v95_v29 = vpop.permute.xlu0 %94  ;;  %v47_v30 = vpop.permute.xlu1 %46 }
  0xb5   :  { %v109_v32 = vsel %vm108_vm7, %v95_v29, %v97_v3 }
  0xb6   :  { %v251_v34 = vsel %vm244_vm1, %v81_v31, %v109_v32 }
  0xb7   :  { %310 = vrot.lane.b32.xlu0 %v251_v34, %s1342_s19 }
  0xb8   :  { %v49_v35 = vpop.permute.xlu0 %48  ;;  %v51_v36 = vpop.permute.xlu1 %50 }
  0xb9   :  { %v58_v37 = vsel %vm56_vm8, %v47_v30, %v49_v35  ;;  %v59_v38 = vsel %vm56_vm8, %v49_v35, %v51_v36 }
  0xba   :  { %v246_v39 = vsel %vm244_vm1, %v1416_v9, %v58_v37  ;;  %v247_v40 = vsel %vm244_vm1, %v1421_v10, %v59_v38 }
  0xbb   :  { %300 = vrot.lane.b32.xlu1 %v246_v39, %s1342_s19  ;;  %302 = vrot.lane.b32.xlu0 %v247_v40, %s1342_s19 }
  0xbc   :  { %v77_v42 = vpop.permute.xlu0 %76  ;;  %v79_v43 = vpop.permute.xlu1 %78 }
  0xbd   :  { %v84_v9 = vsel %vm80_vm6, %v75_v2, %v77_v42  ;;  %v85_v46 = vsel %vm80_vm6, %v77_v42, %v79_v43 }
  0xc0   :  { %v103_v44 = vpop.permute.xlu0 %102  ;;  %v105_v45 = vpop.permute.xlu1 %104 }
  0xc1   :  { %v112_v10 = vsel %vm108_vm7, %v101_v12, %v103_v44  ;;  %v113_v47 = vsel %vm108_vm7, %v103_v44, %v105_v45  ;;  %v24_v12 = vld [vmem:[%s2001_s2] sm:$0xff] }
  0xc2   :  { %v254_v48 = vsel %vm244_vm1, %v84_v9, %v112_v10  ;;  %v255_v49 = vsel %vm244_vm1, %v85_v46, %v113_v47 }
  0xc3   :  { %316 = vrot.lane.b32.xlu1 %v254_v48, %s1342_s19  ;;  %318 = vrot.lane.b32.xlu0 %v255_v49, %s1342_s19 }
  0xc4   :  { %v45_v50 = vpop.permute.xlu0 %44  ;;  %v53_v51 = vpop.permute.xlu1 %52 }
  0xc5   :  { %v57_v52 = vsel %vm56_vm8, %v45_v50, %v47_v30  ;;  %v60_v53 = vsel %vm56_vm8, %v51_v36, %v53_v51 }
  0xc6   :  { %v245_v54 = vsel %vm244_vm1, %v1410_v7, %v57_v52  ;;  %v248_v56 = vsel %vm244_vm1, %v1428_v11, %v60_v53 }
  0xc7   :  { %298 = vrot.lane.b32.xlu1 %v245_v54, %s1342_s19  ;;  %304 = vrot.lane.b32.xlu0 %v248_v56, %s1342_s19  ;;  %v23_v56 = vld [vmem:[%s2002_s1] sm:$0xff] }
  0xc8   :  { %v55_v57 = vpop.permute.xlu0 %54  ;;  %v237_v58 = vpop.permute.xlu1 %236 }
  0xc9   :  { %v61_v60 = vsel %vm56_vm8, %v53_v51, %v55_v57  ;;  %v243_v61 = vsel %vm238_vm0, %v1493_v33, %v237_v58  ;;  %v1344_v33 = vmov 0   ;;  %v250_v8 = vsel %vm244_vm1, %v1462_v15, %v55_v57 }
  0xca   :  { %v249_v62 = vsel %vm244_vm1, %v1455_v14, %v61_v60  ;;  %1320 = vset.pattern.permute.xlu0 %v1344_v33  ;;  %1319 = vset.pattern.permute.xlu1 %v1344_v33 }
  0xcb   :  { %306 = vrot.lane.b32.xlu1 %v249_v62, %s1342_s19  ;;  %356 = vrot.lane.b32.xlu0 %v243_v61, %s1342_s19 }
  0xcc   :  { %v189_v7 = vpop.permute.xlu0 %188  ;;  %v213_v11 = vpop.permute.xlu1 %212 }
  0xcd   :  { %v195_v63 = vsel %vm190_vm3, %v1516_v55, %v189_v7  ;;  %v219_v0 = vsel %vm214_vm2, %v1522_v59, %v213_v11 }
  0xce   :  { %v268_v1 = vsel %vm244_vm1, %v195_v63, %v219_v0 }
  0xcf   :  { %344 = vrot.lane.b32.xlu1 %v268_v1, %s1342_s19 }
  0xd0   :  { %v138_v2 = vpop.permute.xlu0 %137  ;;  %v165_v14 = vpop.permute.xlu1 %164 }
  0xd1   :  { %v144_v3 = vsel %vm139_vm4, %v1540_v19, %v138_v2  ;;  %v171_v4 = vsel %vm166_vm5, %v1546_v24, %v165_v14 }
  0xd2   :  { %v262_v55 = vsel %vm244_vm1, %v144_v3, %v171_v4  ;;  %v645_v4 = vlaneseq }
  0xd3   :  { %332 = vrot.lane.b32.xlu0 %v262_v55, %s1342_s19 }
  0xd4   :  { %v107_v59 = vpop.permute.xlu0 %106  ;;  %v646_v55 = vshrl.u32 %v645_v4, 7 }
  0xd5   :  { %v114_v5 = vsel %vm108_vm7, %v105_v45, %v107_v59 }
  0xd6   :  { %v256_v6 = vsel %vm244_vm1, %v79_v43, %v114_v5  ;;  %v647_v59 = vsub.s32 0, %v646_v55 }
  0xd7   :  { %320 = vrot.lane.b32.xlu1 %v256_v6, %s1342_s19  ;;  %308 = vrot.lane.b32.xlu0 %v250_v8, %s1342_s19  ;;  %v643_v6 = vld [vmem:[%s2003_s5] sm:$0x3f]  ;;  %v651_v8 = vsub.s32 1, %v646_v55 }
  0xdb   :  { %271 = vperm.xlu1 %1319, %v24_v12   ;;  %746 = vrot.lane.b32.xlu0 %v1343_v41, %s1340_s13 }
  0xdf   :  { %728 = vrot.lane.b32.xlu0 %v1343_v41, %s1339_s12  ;;  %856 = vrot.lane.b32.xlu1 %v1343_v41, %s1342_s19 }
  0xe3   :  { %711 = vrot.lane.b32.xlu0 %v1343_v41, %s1341_s14 }
  0xe7   :  { %v347_v15 = vpop.permute.xlu1 %346 }
  0xec   :  { %v351_v13 = vpop.permute.xlu0 %350  ;;  %v349_v16 = vpop.permute.xlu1 %348 }
  0xed   :  { %v380_v17 = vsel %vm358_vm9, %v349_v16, %v351_v13  ;;  %v379_v18 = vsel %vm358_vm9, %v347_v15, %v349_v16 }
  0xee   :  { %1296 = vmatprep.subr.msk.mxu0 %vm244_vm1, %v380_v17  ;;  %v655_v17 = vsub.s32 2, %v646_v55 }
  0xef   :  { %1297 = vmatpush1.msk.msra.mxu0 %vm244_vm1, %v379_v18 }
  0xf8   :  { %v353_v19 = vpop.permute.xlu0 %352 }
  0xf9   :  { %v381_v22 = vsel %vm358_vm9, %v351_v13, %v353_v19  ;;  %v648_v13 = vrot.slane %v643_v6, %v647_v59 }
  0xfc   :  { %v355_v20 = vpop.permute.xlu1 %354  ;;  %v335_v23 = vpop.permute.xlu0 %334 }
  0xfd   :  { %v382_v21 = vsel %vm358_vm9, %v353_v19, %v355_v20 }
  0xfe   :  { %1299 = vmatprep.subr.msk.mxu1 %vm244_vm1, %v382_v21  ;;  %v659_v21 = vsub.s32 3, %v646_v55 }
  0xff   :  { %1300 = vmatpush1.msk.msra.mxu1 %vm244_vm1, %v381_v22 }
 0x100   :  { %v337_v25 = vpop.permute.xlu0 %336 }
 0x101   :  { %v374_v28 = vsel %vm358_vm9, %v335_v23, %v337_v25 }
 0x104   :  { %v323_v24 = vpop.permute.xlu1 %322 }
 0x108   :  { %v339_v26 = vpop.permute.xlu1 %338 }
 0x109   :  { %v375_v27 = vsel %vm358_vm9, %v337_v25, %v339_v26  ;;  %v327_v29 = vpop.permute.xlu0 %326 }
 0x10a   :  { %448 = vmatprep.subr.mxu0 %v375_v27 }
 0x10b   :  { %449 = vmatpush1.msra.mxu0 %v374_v28 }
 0x10c   :  { %v325_v30 = vpop.permute.xlu1 %324 }
 0x10d   :  { %v370_v31 = vsel %vm358_vm9, %v325_v30, %v327_v29  ;;  %v369_v32 = vsel %vm358_vm9, %v323_v24, %v325_v30 }
 0x10e   :  { %450 = vmatprep.subr.mxu0 %v370_v31  ;;  %v660_v31 = vrot.slane %v643_v6, %v659_v21 }
 0x10f   :  { %451 = vmatpush1.msra.mxu0 %v369_v32 }
 0x110   :  { %v341_v34 = vpop.permute.xlu1 %340 }
 0x111   :  { %v343_v35 = vpop.permute.xlu0 %342  ;;  %v376_v37 = vsel %vm358_vm9, %v339_v26, %v341_v34  ;;  %v656_v26 = vrot.slane %v643_v6, %v655_v17 }
 0x112   :  { %v377_v36 = vsel %vm358_vm9, %v341_v34, %v343_v35 }
 0x113   :  { %519 = vmatprep.subr.mxu1 %v377_v36  ;;  %v663_v36 = vsub.s32 4, %v646_v55 }
 0x114   :  { %520 = vmatpush1.msra.mxu1 %v376_v37  ;;  %v667_v37 = vsub.s32 5, %v646_v55 }
 0x119   :  { %v313_v38 = vpop.permute.xlu0 %312 }
 0x11d   :  { %v315_v39 = vpop.permute.xlu1 %314 }
 0x11e   :  { %v365_v40 = vsel %vm358_vm9, %v313_v38, %v315_v39 }
 0x11f   :  { %452 = vmatprep.subr.mxu0 %v365_v40  ;;  %v664_v40 = vrot.slane %v643_v6, %v663_v36 }
 0x121   :  { %v329_v42 = vpop.permute.xlu0 %328 }
 0x122   :  { %v371_v45 = vsel %vm358_vm9, %v327_v29, %v329_v42 }
 0x125   :  { %v331_v43 = vpop.permute.xlu1 %330 }
 0x126   :  { %v372_v44 = vsel %vm358_vm9, %v329_v42, %v331_v43 }
 0x127   :  { %521 = vmatprep.subr.mxu1 %v372_v44 }
 0x128   :  { %522 = vmatpush1.msra.mxu1 %v371_v45  ;;  %v668_v45 = vrot.slane %v643_v6, %v667_v37 }
 0x129   :  { %v311_v9 = vpop.permute.xlu0 %310 }
 0x12a   :  { %v364_v46 = vsel %vm358_vm9, %v311_v9, %v313_v38 }
 0x12b   :  { %453 = vmatpush1.msra.mxu0 %v364_v46 }
 0x12d   :  { %v303_v10 = vpop.permute.xlu0 %302  ;;  %v301_v47 = vpop.permute.xlu1 %300 }
 0x12e   :  { %v360_v48 = vsel %vm358_vm9, %v301_v47, %v303_v10 }
 0x12f   :  { %454 = vmatprep.subr.mxu0 %v360_v48 }
 0x135   :  { %v319_v49 = vpop.permute.xlu0 %318  ;;  %v317_v50 = vpop.permute.xlu1 %316 }
 0x136   :  { %v367_v51 = vsel %vm358_vm9, %v317_v50, %v319_v49  ;;  %v366_v52 = vsel %vm358_vm9, %v315_v39, %v317_v50 }
 0x137   :  { %523 = vmatprep.subr.mxu1 %v367_v51 }
 0x138   :  { %524 = vmatpush1.msra.mxu1 %v366_v52 }
 0x139   :  { %v305_v53 = vpop.permute.xlu0 %304  ;;  %v299_v54 = vpop.permute.xlu1 %298 }
 0x13a   :  { %v359_v57 = vsel %vm358_vm9, %v299_v54, %v301_v47  ;;  %v361_v7 = vsel %vm358_vm9, %v303_v10, %v305_v53 }
 0x13b   :  { %455 = vmatpush1.msra.mxu0 %v359_v57 }
 0x13c   :  { %1298 = vmatmul.mubr.msk.f32.vlgmr.msra.gmra.mxu0 %vm408_vm10, %v23_v56 }
 0x13d   :  { %v357_v58 = vpop.permute.xlu0 %356  ;;  %v307_v60 = vpop.permute.xlu1 %306  ;;  %630 = vmatprep.mubr.f32.mxu0 %v1343_v41 }
 0x13e   :  { %v383_v61 = vsel %vm358_vm9, %v355_v20, %v357_v58  ;;  %1302 = vmatprep.subr.msk.mxu0 %vm244_vm1, %v357_v58  ;;  %v362_v62 = vsel %vm358_vm9, %v305_v53, %v307_v60  ;;  %v652_v20 = vrot.slane %v643_v6, %v651_v8 }
 0x13f   :  { %525 = vmatprep.subr.mxu1 %v362_v62  ;;  %1303 = vmatpush1.msk.msra.mxu0 %vm244_vm1, %v383_v61 }
 0x140   :  { %526 = vmatpush1.msra.mxu1 %v361_v7 }
 0x141   :  { %1301 = vmatmul.mubr.msk.f32.vlgmr.msra.gmra.mxu1 %vm408_vm10, %v23_v56  ;;  %v345_v11 = vpop.permute.xlu1 %344 }
 0x142   :  { %590 = vmatprep.subr.mxu0 %v345_v11  ;;  %v378_v63 = vsel %vm358_vm9, %v343_v35, %v345_v11  ;;  %1131 = vmatprep.mubr.f32.mxu1 %v1343_v41 }
 0x143   :  { %591 = vmatpush1.msra.mxu0 %v378_v63 }
 0x145   :  { %v333_v0 = vpop.permute.xlu0 %332 }
 0x146   :  { %592 = vmatprep.subr.mxu0 %v333_v0  ;;  %v373_v1 = vsel %vm358_vm9, %v331_v43, %v333_v0 }
 0x147   :  { %593 = vmatpush1.msra.mxu0 %v373_v1 }
 0x149   :  { %v309_v33 = vpop.permute.xlu0 %308  ;;  %v321_v2 = vpop.permute.xlu1 %320 }
 0x14a   :  { %594 = vmatprep.subr.mxu0 %v321_v2  ;;  %v368_v14 = vsel %vm358_vm9, %v319_v49, %v321_v2  ;;  %v363_v3 = vsel %vm358_vm9, %v307_v60, %v309_v33 }
 0x14b   :  { %595 = vmatpush1.msra.mxu0 %v368_v14 }
 0x14c   :  { %596 = vmatprep.subr.mxu0 %v309_v33 }
 0x14d   :  { %597 = vmatpush1.msra.mxu0 %v363_v3  ;;  %v747_v48 = vpop.permute.xlu0 %746 }
 0x14e   :  { %1304 = vmatmul.mubr.msk.f32.vlgmr.msra.gmra.mxu0 %vm408_vm10, %v23_v56 }
 0x14f   :  { %1202 = vmatprep.mubr.f32.mxu0 %v1343_v41 }
 0x151   :  { %v729_v49 = vpop.permute.xlu0 %728 }
 0x155   :  { %v712_v50 = vpop.permute.xlu0 %711 }
 0x156   :  { %v272_v5 = vpop.permute.xlu1 %271 }
 0x15a   :  { %v1743_v51 = vpop.permute.xlu1 %856 }
 0x1fc   :  { %v490_v12 = vpop.f32.mrf.mxu0 }
 0x1fd   :  { %v491_v15 = vadd.f32 %v490_v12, %v272_v5 }
 0x1fe   :  { %v492_v16 = vpop.f32.mrf.mxu0 }
 0x1ff   :  { %v637_v18 = vmax.f32 %v491_v15, 0.0  ;;  %v493_v19 = vadd.f32 %v492_v16, %v272_v5 }
 0x201   :  { %v638_v22 = vmax.f32 %v493_v19, 0.0  ;;  %v675_v23 = vmul.f32 %v648_v13, %v637_v18  ;;  %v561_v24 = vpop.f32.mrf.mxu1 }
 0x202   :  { %v562_v25 = vadd.f32 %v561_v24, %v272_v5 }
 0x203   :  { %v676_v27 = vmul.f32 %v652_v20, %v638_v22  ;;  %v563_v28 = vpop.f32.mrf.mxu1  ;;  %817 = vrot.lane.b32.xlu1 %v675_v23, %s1336_s27  ;;  %834 = vrot.lane.b32.xlu0 %v675_v23, %s1334_s25 }
 0x204   :  { %v639_v29 = vmax.f32 %v562_v25, 0.0  ;;  %v564_v30 = vadd.f32 %v563_v28, %v272_v5 }
 0x206   :  { %v1666_v32 = vmul.f32 %v656_v26, %v639_v29  ;;  %v640_v34 = vmax.f32 %v564_v30, 0.0 }
 0x208   :  { %v1668_v35 = vmul.f32 %v660_v31, %v640_v34  ;;  %821 = vrot.lane.b32.xlu1 %v1666_v32, %s1336_s27  ;;  %838 = vrot.lane.b32.xlu0 %v1666_v32, %s1334_s25 }
 0x20c   :  { %783 = vrot.lane.b32.xlu1 %v675_v23, %s1338_s7  ;;  %800 = vrot.lane.b32.xlu0 %v675_v23, %s1335_s26 }
 0x20e   :  { %v632_v38 = vpop.f32.mrf.mxu0 }
 0x20f   :  { %v633_v39 = vadd.f32 %v632_v38, %v272_v5 }
 0x210   :  { %v634_v42 = vpop.f32.mrf.mxu0  ;;  %787 = vrot.lane.b32.xlu1 %v1666_v32, %s1338_s7  ;;  %804 = vrot.lane.b32.xlu0 %v1666_v32, %s1335_s26 }
 0x211   :  { %v641_v43 = vmax.f32 %v633_v39, 0.0  ;;  %v635_v44 = vadd.f32 %v634_v42, %v272_v5 }
 0x213   :  { %v1680_v9 = vmul.f32 %v664_v40, %v641_v43  ;;  %v642_v46 = vmax.f32 %v635_v44, 0.0 }
 0x214   :  { %748 = vrot.lane.b32.xlu1 %v675_v23, %s1340_s13  ;;  %766 = vrot.lane.b32.xlu0 %v675_v23, %s1337_s30 }
 0x215   :  { %v680_v10 = vmul.f32 %v668_v45, %v642_v46 }
 0x217   :  { %695 = vst.msk [vmem:[#allocation2 + $0x30] sm:$0xff] %vm688_vm11, %v680_v10 }
 0x218   :  { %752 = vrot.lane.b32.xlu1 %v1666_v32, %s1340_s13  ;;  %770 = vrot.lane.b32.xlu0 %v1666_v32, %s1337_s30 }
 0x21c   :  { %730 = vrot.lane.b32.xlu1 %v675_v23, %s1339_s12  ;;  %819 = vrot.lane.b32.xlu0 %v676_v27, %s1336_s27 }
 0x21e   :  { %v704_v47 = vld [vmem:[#allocation2 + $0x30] sm:$0xff] }
 0x220   :  { %734 = vrot.lane.b32.xlu1 %v1666_v32, %s1339_s12  ;;  %785 = vrot.lane.b32.xlu0 %v676_v27, %s1338_s7 }
 0x224   :  { %713 = vrot.lane.b32.xlu1 %v675_v23, %s1341_s14  ;;  %750 = vrot.lane.b32.xlu0 %v676_v27, %s1340_s13 }
 0x228   :  { %717 = vrot.lane.b32.xlu1 %v1666_v32, %s1341_s14  ;;  %732 = vrot.lane.b32.xlu0 %v676_v27, %s1339_s12 }
 0x22c   :  { %858 = vrot.lane.b32.xlu1 %v675_v23, %s1342_s19  ;;  %715 = vrot.lane.b32.xlu0 %v676_v27, %s1341_s14 }
 0x230   :  { %836 = vrot.lane.b32.xlu1 %v676_v27, %s1334_s25  ;;  %823 = vrot.lane.b32.xlu0 %v1668_v35, %s1336_s27 }
 0x234   :  { %802 = vrot.lane.b32.xlu1 %v676_v27, %s1335_s26  ;;  %789 = vrot.lane.b32.xlu0 %v1668_v35, %s1338_s7 }
 0x238   :  { %768 = vrot.lane.b32.xlu1 %v676_v27, %s1337_s30  ;;  %754 = vrot.lane.b32.xlu0 %v1668_v35, %s1340_s13 }
 0x23c   :  { %840 = vrot.lane.b32.xlu1 %v1668_v35, %s1334_s25  ;;  %860 = vrot.lane.b32.xlu0 %v676_v27, %s1342_s19 }
 0x240   :  { %806 = vrot.lane.b32.xlu1 %v1668_v35, %s1335_s26  ;;  %842 = vrot.lane.b32.xlu0 %v1680_v9, %s1334_s25 }
 0x244   :  { %772 = vrot.lane.b32.xlu1 %v1668_v35, %s1337_s30  ;;  %808 = vrot.lane.b32.xlu0 %v1680_v9, %s1335_s26 }
 0x248   :  { %736 = vrot.lane.b32.xlu1 %v1668_v35, %s1339_s12  ;;  %774 = vrot.lane.b32.xlu0 %v1680_v9, %s1337_s30 }
 0x24c   :  { %719 = vrot.lane.b32.xlu1 %v1668_v35, %s1341_s14  ;;  %738 = vrot.lane.b32.xlu0 %v1680_v9, %s1339_s12 }
 0x250   :  { %825 = vrot.lane.b32.xlu1 %v1680_v9, %s1336_s27  ;;  %721 = vrot.lane.b32.xlu0 %v1680_v9, %s1341_s14 }
 0x254   :  { %791 = vrot.lane.b32.xlu1 %v1680_v9, %s1338_s7  ;;  %827 = vrot.lane.b32.xlu0 %v704_v47, %s1336_s27 }
 0x258   :  { %756 = vrot.lane.b32.xlu1 %v1680_v9, %s1340_s13  ;;  %793 = vrot.lane.b32.xlu0 %v704_v47, %s1338_s7 }
 0x25c   :  { %844 = vrot.lane.b32.xlu1 %v704_v47, %s1334_s25  ;;  %758 = vrot.lane.b32.xlu0 %v704_v47, %s1340_s13 }
 0x260   :  { %810 = vrot.lane.b32.xlu1 %v704_v47, %s1335_s26 }
 0x264   :  { %776 = vrot.lane.b32.xlu1 %v704_v47, %s1337_s30 }
 0x275   :  { %v835_v52 = vpop.permute.xlu0 %834  ;;  %v818_v53 = vpop.permute.xlu1 %817 }
 0x276   :  { %952 = vrot.lane.b32.xlu1 %v835_v52, %s1342_s19  ;;  %940 = vrot.lane.b32.xlu0 %v818_v53, %s1342_s19 }
 0x27a   :  { %v1747_v54 = vpop.permute.xlu0 %838  ;;  %v1749_v56 = vpop.permute.xlu1 %821 }
 0x27e   :  { %v801_v57 = vpop.permute.xlu0 %800  ;;  %v784_v58 = vpop.permute.xlu1 %783 }
 0x27f   :  { %928 = vrot.lane.b32.xlu1 %v801_v57, %s1342_s19  ;;  %916 = vrot.lane.b32.xlu0 %v784_v58, %s1342_s19 }
 0x282   :  { %v1753_v60 = vpop.permute.xlu0 %804  ;;  %v1755_v61 = vpop.permute.xlu1 %787 }
 0x286   :  { %v767_v62 = vpop.permute.xlu0 %766  ;;  %v749_v7 = vpop.permute.xlu1 %748 }
 0x287   :  { %v760_v11 = vsel %vm108_vm7, %v747_v48, %v749_v7  ;;  %904 = vrot.lane.b32.xlu1 %v767_v62, %s1342_s19 }
 0x288   :  { %892 = vrot.lane.b32.xlu0 %v760_v11, %s1342_s19 }
 0x28a   :  { %v1760_v63 = vpop.permute.xlu0 %770  ;;  %v1762_v0 = vpop.permute.xlu1 %752 }
 0x28e   :  { %v820_v1 = vpop.permute.xlu0 %819  ;;  %v731_v33 = vpop.permute.xlu1 %730 }
 0x28f   :  { %v740_v2 = vsel %vm80_vm6, %v729_v49, %v731_v33  ;;  %v829_v19 = vsel %vm214_vm2, %v818_v53, %v820_v1  ;;  %v830_v20 = vsel %vm214_vm2, %v820_v1, %v1749_v56 }
 0x290   :  { %880 = vrot.lane.b32.xlu1 %v740_v2, %s1342_s19 }
 0x292   :  { %v786_v14 = vpop.permute.xlu0 %785  ;;  %v1766_v3 = vpop.permute.xlu1 %734 }
 0x293   :  { %v795_v25 = vsel %vm166_vm5, %v784_v58, %v786_v14  ;;  %v796_v26 = vsel %vm166_vm5, %v786_v14, %v1755_v61 }
 0x296   :  { %v751_v4 = vpop.permute.xlu0 %750  ;;  %v714_v55 = vpop.permute.xlu1 %713 }
 0x297   :  { %v723_v59 = vsel %vm56_vm8, %v712_v50, %v714_v55  ;;  %v761_v34 = vsel %vm108_vm7, %v749_v7, %v751_v4  ;;  %v762_v36 = vsel %vm108_vm7, %v751_v4, %v1762_v0 }
 0x298   :  { %868 = vrot.lane.b32.xlu0 %v723_v59, %s1342_s19 }
 0x29a   :  { %v733_v5 = vpop.permute.xlu0 %732  ;;  %v1770_v6 = vpop.permute.xlu1 %717 }
 0x29b   :  { %v741_v38 = vsel %vm80_vm6, %v731_v33, %v733_v5  ;;  %v742_v39 = vsel %vm80_vm6, %v733_v5, %v1766_v3 }
 0x29e   :  { %v1772_v8 = vpop.permute.xlu1 %858  ;;  %v716_v12 = vpop.permute.xlu0 %715 }
 0x29f   :  { %v724_v43 = vsel %vm56_vm8, %v714_v55, %v716_v12  ;;  %v725_v44 = vsel %vm56_vm8, %v716_v12, %v1770_v6 }
 0x2a2   :  { %v837_v15 = vpop.permute.xlu1 %836  ;;  %v1779_v17 = vpop.permute.xlu0 %823 }
 0x2a3   :  { %v846_v13 = vsel %vm238_vm0, %v835_v52, %v837_v15  ;;  %v847_v16 = vsel %vm238_vm0, %v837_v15, %v1747_v54  ;;  %v831_v46 = vsel %vm214_vm2, %v1749_v56, %v1779_v17 }
 0x2a4   :  { %956 = vrot.lane.b32.xlu0 %v847_v16, %s1342_s19  ;;  %954 = vrot.lane.b32.xlu1 %v846_v13, %s1342_s19 }
 0x2a6   :  { %v803_v18 = vpop.permute.xlu1 %802  ;;  %v1789_v24 = vpop.permute.xlu0 %789 }
 0x2a7   :  { %v812_v22 = vsel %vm190_vm3, %v801_v57, %v803_v18  ;;  %v813_v23 = vsel %vm190_vm3, %v803_v18, %v1753_v60  ;;  %v797_v48 = vsel %vm166_vm5, %v1755_v61, %v1789_v24 }
 0x2a8   :  { %942 = vrot.lane.b32.xlu0 %v829_v19, %s1342_s19  ;;  %944 = vrot.lane.b32.xlu1 %v830_v20, %s1342_s19  ;;  %v697_v20 = vld [vmem:[%s2004_s4] sm:$0xff] }
 0x2aa   :  { %v769_v21 = vpop.permute.xlu1 %768  ;;  %v755_v28 = vpop.permute.xlu0 %754 }
 0x2ab   :  { %v778_v29 = vsel %vm139_vm4, %v767_v62, %v769_v21  ;;  %v779_v30 = vsel %vm139_vm4, %v769_v21, %v1760_v63  ;;  %v763_v53 = vsel %vm108_vm7, %v1762_v0, %v755_v28 }
 0x2ac   :  { %932 = vrot.lane.b32.xlu0 %v813_v23, %s1342_s19  ;;  %930 = vrot.lane.b32.xlu1 %v812_v22, %s1342_s19 }
 0x2ae   :  { %v841_v27 = vpop.permute.xlu1 %840  ;;  %v1806_v37 = vpop.permute.xlu0 %860 }
 0x2af   :  { %v848_v10 = vsel %vm238_vm0, %v1747_v54, %v841_v27 }
 0x2b0   :  { %918 = vrot.lane.b32.xlu0 %v795_v25, %s1342_s19  ;;  %920 = vrot.lane.b32.xlu1 %v796_v26, %s1342_s19 }
 0x2b2   :  { %v807_v31 = vpop.permute.xlu1 %806  ;;  %v843_v42 = vpop.permute.xlu0 %842 }
 0x2b3   :  { %v814_v49 = vsel %vm190_vm3, %v1753_v60, %v807_v31  ;;  %v849_v61 = vsel %vm238_vm0, %v841_v27, %v843_v42 }
 0x2b4   :  { %908 = vrot.lane.b32.xlu0 %v779_v30, %s1342_s19  ;;  %906 = vrot.lane.b32.xlu1 %v778_v29, %s1342_s19 }
 0x2b6   :  { %v773_v40 = vpop.permute.xlu1 %772  ;;  %v809_v47 = vpop.permute.xlu0 %808 }
 0x2b7   :  { %v780_v54 = vsel %vm139_vm4, %v1760_v63, %v773_v40  ;;  %v815_v11 = vsel %vm190_vm3, %v807_v31, %v809_v47 }
 0x2b8   :  { %894 = vrot.lane.b32.xlu0 %v761_v34, %s1342_s19  ;;  %896 = vrot.lane.b32.xlu1 %v762_v36, %s1342_s19 }
 0x2ba   :  { %v737_v45 = vpop.permute.xlu1 %736  ;;  %v775_v52 = vpop.permute.xlu0 %774 }
 0x2bb   :  { %v743_v57 = vsel %vm80_vm6, %v1766_v3, %v737_v45  ;;  %v781_v1 = vsel %vm139_vm4, %v773_v40, %v775_v52 }
 0x2bc   :  { %884 = vrot.lane.b32.xlu0 %v742_v39, %s1342_s19  ;;  %882 = vrot.lane.b32.xlu1 %v741_v38, %s1342_s19 }
 0x2be   :  { %v720_v50 = vpop.permute.xlu1 %719  ;;  %v739_v60 = vpop.permute.xlu0 %738 }
 0x2bf   :  { %v726_v58 = vsel %vm56_vm8, %v1770_v6, %v720_v50  ;;  %v744_v14 = vsel %vm80_vm6, %v737_v45, %v739_v60 }
 0x2c0   :  { %870 = vrot.lane.b32.xlu0 %v724_v43, %s1342_s19  ;;  %872 = vrot.lane.b32.xlu1 %v725_v44, %s1342_s19 }
 0x2c2   :  { %v826_v56 = vpop.permute.xlu1 %825  ;;  %v722_v7 = vpop.permute.xlu0 %721 }
 0x2c3   :  { %v832_v63 = vsel %vm214_vm2, %v1779_v17, %v826_v56  ;;  %v727_v59 = vsel %vm56_vm8, %v720_v50, %v722_v7 }
 0x2c4   :  { %946 = vrot.lane.b32.xlu1 %v831_v46, %s1342_s19  ;;  %958 = vrot.lane.b32.xlu0 %v848_v10, %s1342_s19 }
 0x2c6   :  { %v792_v62 = vpop.permute.xlu1 %791  ;;  %v828_v2 = vpop.permute.xlu0 %827 }
 0x2c7   :  { %v798_v33 = vsel %vm166_vm5, %v1789_v24, %v792_v62  ;;  %v833_v5 = vsel %vm214_vm2, %v826_v56, %v828_v2 }
 0x2c8   :  { %922 = vrot.lane.b32.xlu1 %v797_v48, %s1342_s19  ;;  %934 = vrot.lane.b32.xlu0 %v814_v49, %s1342_s19 }
 0x2ca   :  { %v757_v0 = vpop.permute.xlu1 %756  ;;  %v794_v55 = vpop.permute.xlu0 %793 }
 0x2cb   :  { %v764_v3 = vsel %vm108_vm7, %v755_v28, %v757_v0  ;;  %v799_v12 = vsel %vm166_vm5, %v792_v62, %v794_v55 }
 0x2cc   :  { %898 = vrot.lane.b32.xlu1 %v763_v53, %s1342_s19  ;;  %910 = vrot.lane.b32.xlu0 %v780_v54, %s1342_s19 }
 0x2ce   :  { %v845_v4 = vpop.permute.xlu1 %844  ;;  %v759_v13 = vpop.permute.xlu0 %758 }
 0x2cf   :  { %v850_v15 = vsel %vm238_vm0, %v843_v42, %v845_v4  ;;  %v765_v16 = vsel %vm108_vm7, %v757_v0, %v759_v13  ;;  %v1930_v0 = vld [vmem:[%s2005_s3] sm:$0xff] }
 0x2d0   :  { %886 = vrot.lane.b32.xlu0 %v743_v57, %s1342_s19  ;;  %874 = vrot.lane.b32.xlu1 %v726_v58, %s1342_s19 }
 0x2d2   :  { %v811_v6 = vpop.permute.xlu1 %810 }
 0x2d3   :  { %v816_v17 = vsel %vm190_vm3, %v809_v47, %v811_v6 }
 0x2d4   :  { %890 = vrot.lane.b32.xlu0 %v739_v60, %s1342_s19  ;;  %960 = vrot.lane.b32.xlu1 %v849_v61, %s1342_s19 }
 0x2d6   :  { %v777_v18 = vpop.permute.xlu1 %776 }
 0x2d7   :  { %v782_v19 = vsel %vm139_vm4, %v775_v52, %v777_v18 }
 0x2d8   :  { %936 = vrot.lane.b32.xlu1 %v815_v11, %s1342_s19  ;;  %948 = vrot.lane.b32.xlu0 %v832_v63, %s1342_s19  ;;  %v965_v63 = vsel %vm358_vm9, %v1772_v8, %v1806_v37 }
 0x2dc   :  { %912 = vrot.lane.b32.xlu1 %v781_v1, %s1342_s19  ;;  %924 = vrot.lane.b32.xlu0 %v798_v33, %s1342_s19  ;;  %v964_v1 = vsel %vm358_vm9, %v1743_v51, %v1772_v8 }
 0x2e0   :  { %888 = vrot.lane.b32.xlu1 %v744_v14, %s1342_s19  ;;  %900 = vrot.lane.b32.xlu0 %v764_v3, %s1342_s19 }
 0x2e4   :  { %950 = vrot.lane.b32.xlu1 %v833_v5, %s1342_s19  ;;  %876 = vrot.lane.b32.xlu0 %v727_v59, %s1342_s19 }
 0x2e8   :  { %926 = vrot.lane.b32.xlu1 %v799_v12, %s1342_s19  ;;  %962 = vrot.lane.b32.xlu0 %v850_v15, %s1342_s19  ;;  %v941_v21 = vpop.permute.xlu0 %940  ;;  %v953_v22 = vpop.permute.xlu1 %952 }
 0x2ec   :  { %902 = vrot.lane.b32.xlu1 %v765_v16, %s1342_s19  ;;  %938 = vrot.lane.b32.xlu0 %v816_v17, %s1342_s19 }
 0x2f0   :  { %878 = vrot.lane.b32.xlu1 %v722_v7, %s1342_s19  ;;  %914 = vrot.lane.b32.xlu0 %v782_v19, %s1342_s19 }
 0x2f1   :  { %v917_v23 = vpop.permute.xlu0 %916  ;;  %v929_v24 = vpop.permute.xlu1 %928 }
 0x2f4   :  { %864 = vrot.lane.b32.xlu1 %v1668_v35, %s1342_s19  ;;  %862 = vrot.lane.b32.xlu0 %v1666_v32, %s1342_s19 }
 0x2f8   :  { %853 = vperm.xlu1 %1319, %v697_v20   ;;  %866 = vrot.lane.b32.xlu0 %v1680_v9, %s1342_s19 }
 0x2f9   :  { %v905_v25 = vpop.permute.xlu1 %904 }
 0x2fa   :  { %v893_v26 = vpop.permute.xlu0 %892 }
 0x302   :  { %v881_v27 = vpop.permute.xlu1 %880 }
 0x30a   :  { %v869_v28 = vpop.permute.xlu0 %868 }
 0x316   :  { %v1887_v35 = vpop.permute.xlu0 %956  ;;  %v955_v29 = vpop.permute.xlu1 %954 }
 0x317   :  { %v1004_v32 = vsel %vm358_vm9, %v953_v22, %v955_v29  ;;  %v1005_v30 = vsel %vm358_vm9, %v955_v29, %v1887_v35 }
 0x318   :  { %1081 = vmatprep.subr.mxu1 %v1005_v30 }
 0x319   :  { %1082 = vmatpush1.msra.mxu1 %v1004_v32 }
 0x31a   :  { %v943_v31 = vpop.permute.xlu0 %942  ;;  %v1892_v9 = vpop.permute.xlu1 %944 }
 0x31b   :  { %v999_v34 = vsel %vm358_vm9, %v941_v21, %v943_v31  ;;  %v1000_v36 = vsel %vm358_vm9, %v943_v31, %v1892_v9 }
 0x31c   :  { %1083 = vmatprep.subr.mxu1 %v1000_v36 }
 0x31d   :  { %1084 = vmatpush1.msra.mxu1 %v999_v34 }
 0x31e   :  { %v1897_v38 = vpop.permute.xlu0 %932  ;;  %v931_v39 = vpop.permute.xlu1 %930 }
 0x31f   :  { %v994_v40 = vsel %vm358_vm9, %v929_v24, %v931_v39  ;;  %v995_v42 = vsel %vm358_vm9, %v931_v39, %v1897_v38 }
 0x320   :  { %1085 = vmatprep.subr.mxu1 %v995_v42 }
 0x321   :  { %1086 = vmatpush1.msra.mxu1 %v994_v40 }
 0x322   :  { %v919_v43 = vpop.permute.xlu0 %918  ;;  %v1902_v44 = vpop.permute.xlu1 %920 }
 0x323   :  { %v989_v45 = vsel %vm358_vm9, %v917_v23, %v919_v43  ;;  %v990_v46 = vsel %vm358_vm9, %v919_v43, %v1902_v44 }
 0x324   :  { %1087 = vmatprep.subr.mxu1 %v990_v46 }
 0x325   :  { %1088 = vmatpush1.msra.mxu1 %v989_v45 }
 0x326   :  { %v1907_v10 = vpop.permute.xlu0 %908  ;;  %v907_v47 = vpop.permute.xlu1 %906 }
 0x327   :  { %v984_v48 = vsel %vm358_vm9, %v905_v25, %v907_v47  ;;  %v985_v49 = vsel %vm358_vm9, %v907_v47, %v1907_v10 }
 0x328   :  { %1089 = vmatprep.subr.mxu1 %v985_v49 }
 0x329   :  { %1090 = vmatpush1.msra.mxu1 %v984_v48 }
 0x32a   :  { %v895_v50 = vpop.permute.xlu0 %894  ;;  %v1912_v52 = vpop.permute.xlu1 %896 }
 0x32b   :  { %v979_v53 = vsel %vm358_vm9, %v893_v26, %v895_v50  ;;  %v980_v54 = vsel %vm358_vm9, %v895_v50, %v1912_v52 }
 0x32c   :  { %1091 = vmatprep.subr.mxu1 %v980_v54 }
 0x32d   :  { %1092 = vmatpush1.msra.mxu1 %v979_v53 }
 0x32e   :  { %v1917_v56 = vpop.permute.xlu0 %884  ;;  %v883_v57 = vpop.permute.xlu1 %882 }
 0x32f   :  { %v974_v58 = vsel %vm358_vm9, %v881_v27, %v883_v57  ;;  %v975_v60 = vsel %vm358_vm9, %v883_v57, %v1917_v56 }
 0x330   :  { %1093 = vmatprep.subr.mxu1 %v975_v60 }
 0x331   :  { %1094 = vmatpush1.msra.mxu1 %v974_v58 }
 0x332   :  { %v871_v61 = vpop.permute.xlu0 %870  ;;  %v873_v62 = vpop.permute.xlu1 %872 }
 0x333   :  { %v969_v7 = vsel %vm358_vm9, %v869_v28, %v871_v61  ;;  %v970_v11 = vsel %vm358_vm9, %v871_v61, %v873_v62 }
 0x334   :  { %1095 = vmatprep.subr.mxu1 %v970_v11 }
 0x335   :  { %1096 = vmatpush1.msra.mxu1 %v969_v7 }
 0x336   :  { %v959_v33 = vpop.permute.xlu0 %958  ;;  %1097 = vmatprep.subr.mxu1 %v965_v63  ;;  %v947_v2 = vpop.permute.xlu1 %946 }
 0x337   :  { %1098 = vmatpush1.msra.mxu1 %v964_v1  ;;  %v1006_v8 = vsel %vm358_vm9, %v1887_v35, %v959_v33  ;;  %v1001_v16 = vsel %vm358_vm9, %v1892_v9, %v947_v2 }
 0x338   :  { %1305 = vmatmul.mubr.msk.f32.vlgmr.msra.gmra.mxu1 %vm1063_vm12, %v1930_v0 }
 0x339   :  { %1273 = vmatprep.mubr.f32.mxu1 %v1343_v41 }
 0x33a   :  { %v935_v14 = vpop.permute.xlu0 %934  ;;  %v923_v3 = vpop.permute.xlu1 %922 }
 0x33b   :  { %v996_v18 = vsel %vm358_vm9, %v1897_v38, %v935_v14  ;;  %v991_v22 = vsel %vm358_vm9, %v1902_v44, %v923_v3 }
 0x33e   :  { %v911_v4 = vpop.permute.xlu0 %910  ;;  %v899_v55 = vpop.permute.xlu1 %898 }
 0x33f   :  { %v986_v24 = vsel %vm358_vm9, %v1907_v10, %v911_v4  ;;  %v981_v28 = vsel %vm358_vm9, %v1912_v52, %v899_v55 }
 0x342   :  { %v887_v59 = vpop.permute.xlu0 %886  ;;  %v875_v5 = vpop.permute.xlu1 %874 }
 0x343   :  { %v976_v29 = vsel %vm358_vm9, %v1917_v56, %v887_v59  ;;  %v971_v9 = vsel %vm358_vm9, %v873_v62, %v875_v5 }
 0x346   :  { %v1938_v6 = vpop.permute.xlu0 %890  ;;  %v961_v12 = vpop.permute.xlu1 %960 }
 0x347   :  { %v1007_v51 = vsel %vm358_vm9, %v959_v33, %v961_v12 }
 0x348   :  { %1152 = vmatprep.subr.mxu0 %v1007_v51 }
 0x349   :  { %1153 = vmatpush1.msra.mxu0 %v1006_v8 }
 0x34a   :  { %v949_v15 = vpop.permute.xlu0 %948  ;;  %v937_v13 = vpop.permute.xlu1 %936 }
 0x34b   :  { %v1002_v41 = vsel %vm358_vm9, %v947_v2, %v949_v15  ;;  %v997_v17 = vsel %vm358_vm9, %v935_v14, %v937_v13 }
 0x34c   :  { %1154 = vmatprep.subr.mxu0 %v1002_v41 }
 0x34d   :  { %1155 = vmatpush1.msra.mxu0 %v1001_v16 }
 0x34e   :  { %v925_v19 = vpop.permute.xlu0 %924  ;;  %1156 = vmatprep.subr.mxu0 %v997_v17  ;;  %v913_v20 = vpop.permute.xlu1 %912 }
 0x34f   :  { %1157 = vmatpush1.msra.mxu0 %v996_v18  ;;  %v992_v21 = vsel %vm358_vm9, %v923_v3, %v925_v19  ;;  %v987_v23 = vsel %vm358_vm9, %v911_v4, %v913_v20 }
 0x350   :  { %1158 = vmatprep.subr.mxu0 %v992_v21 }
 0x351   :  { %1159 = vmatpush1.msra.mxu0 %v991_v22 }
 0x352   :  { %v901_v25 = vpop.permute.xlu0 %900  ;;  %1160 = vmatprep.subr.mxu0 %v987_v23  ;;  %v889_v26 = vpop.permute.xlu1 %888 }
 0x353   :  { %1161 = vmatpush1.msra.mxu0 %v986_v24  ;;  %v982_v27 = vsel %vm358_vm9, %v899_v55, %v901_v25  ;;  %v977_v35 = vsel %vm358_vm9, %v887_v59, %v889_v26  ;;  %v978_v50 = vsel %vm358_vm9, %v889_v26, %v1938_v6 }
 0x354   :  { %1162 = vmatprep.subr.mxu0 %v982_v27 }
 0x355   :  { %1163 = vmatpush1.msra.mxu0 %v981_v28 }
 0x356   :  { %v877_v32 = vpop.permute.xlu0 %876  ;;  %1164 = vmatprep.subr.mxu0 %v977_v35  ;;  %v951_v30 = vpop.permute.xlu1 %950 }
 0x357   :  { %1165 = vmatpush1.msra.mxu0 %v976_v29  ;;  %v972_v31 = vsel %vm358_vm9, %v875_v5, %v877_v32  ;;  %v1003_v39 = vsel %vm358_vm9, %v949_v15, %v951_v30 }
 0x358   :  { %1166 = vmatprep.subr.mxu0 %v972_v31 }
 0x359   :  { %1167 = vmatpush1.msra.mxu0 %v971_v9 }
 0x35a   :  { %v963_v34 = vpop.permute.xlu0 %962  ;;  %v927_v36 = vpop.permute.xlu1 %926 }
 0x35b   :  { %v1008_v38 = vsel %vm358_vm9, %v961_v12, %v963_v34  ;;  %1223 = vmatprep.subr.mxu1 %v963_v34  ;;  %v993_v44 = vsel %vm358_vm9, %v925_v19, %v927_v36 }
 0x35c   :  { %1224 = vmatpush1.msra.mxu1 %v1008_v38 }
 0x35d   :  { %1225 = vmatprep.subr.mxu1 %v951_v30 }
 0x35e   :  { %v939_v40 = vpop.permute.xlu0 %938  ;;  %1226 = vmatpush1.msra.mxu1 %v1003_v39  ;;  %v903_v42 = vpop.permute.xlu1 %902 }
 0x35f   :  { %v998_v43 = vsel %vm358_vm9, %v937_v13, %v939_v40  ;;  %1227 = vmatprep.subr.mxu1 %v939_v40  ;;  %v983_v47 = vsel %vm358_vm9, %v901_v25, %v903_v42 }
 0x360   :  { %1228 = vmatpush1.msra.mxu1 %v998_v43 }
 0x361   :  { %1229 = vmatprep.subr.mxu1 %v927_v36 }
 0x362   :  { %v915_v45 = vpop.permute.xlu0 %914  ;;  %1230 = vmatpush1.msra.mxu1 %v993_v44  ;;  %v879_v46 = vpop.permute.xlu1 %878 }
 0x363   :  { %v988_v10 = vsel %vm358_vm9, %v913_v20, %v915_v45  ;;  %1231 = vmatprep.subr.mxu1 %v915_v45  ;;  %v973_v54 = vsel %vm358_vm9, %v877_v32, %v879_v46 }
 0x364   :  { %1232 = vmatpush1.msra.mxu1 %v988_v10 }
 0x365   :  { %1233 = vmatprep.subr.mxu1 %v903_v42 }
 0x366   :  { %v863_v48 = vpop.permute.xlu0 %862  ;;  %1234 = vmatpush1.msra.mxu1 %v983_v47  ;;  %v865_v49 = vpop.permute.xlu1 %864 }
 0x367   :  { %v966_v52 = vsel %vm358_vm9, %v1806_v37, %v863_v48  ;;  %1235 = vmatprep.subr.mxu1 %v1938_v6  ;;  %v967_v53 = vsel %vm358_vm9, %v863_v48, %v865_v49 }
 0x368   :  { %1168 = vmatprep.subr.mxu0 %v967_v53  ;;  %1236 = vmatpush1.msra.mxu1 %v978_v50 }
 0x369   :  { %1169 = vmatpush1.msra.mxu0 %v966_v52  ;;  %1237 = vmatprep.subr.mxu1 %v879_v46 }
 0x36a   :  { %v867_v56 = vpop.permute.xlu0 %866  ;;  %1306 = vmatmul.mubr.msk.f32.vlgmr.msra.gmra.mxu0 %vm1063_vm12, %v1930_v0  ;;  %1238 = vmatpush1.msra.mxu1 %v973_v54 }
 0x36b   :  { %v968_v57 = vsel %vm358_vm9, %v865_v49, %v867_v56  ;;  %1239 = vmatprep.subr.mxu1 %v867_v56 }
 0x36c   :  { %1240 = vmatpush1.msra.mxu1 %v968_v57 }
 0x36d   :  { %1307 = vmatmul.mubr.msk.f32.vlgmr.msra.gmra.mxu1 %vm1063_vm12, %v1930_v0 }
 0x373   :  { %v854_v37 = vpop.permute.xlu1 %853 }
 0x3f8   :  { %v1133_v58 = vpop.f32.mrf.mxu1 }
 0x3f9   :  { %v1134_v60 = vadd.f32 %v1133_v58, %v854_v37 }
 0x3fa   :  { %v1135_v61 = vpop.f32.mrf.mxu1 }
 0x3fb   :  { %v1280_v62 = vmax.f32 %v1134_v60, 0.0  ;;  %v1136_v7 = vadd.f32 %v1135_v61, %v854_v37 }
 0x3fd   :  { %1286 = vst [vmem:[%s2006_s6] sm:$0xff] %v1280_v62  ;;  %v1281_v11 = vmax.f32 %v1136_v7, 0.0 }
 0x3ff   :  { %1287 = vst [vmem:[%s2006_s6 + $0x8] sm:$0xff] %v1281_v11 }
 0x42a   :  { %v1204_v63 = vpop.f32.mrf.mxu0 }
 0x42b   :  { %v1205_v1 = vadd.f32 %v1204_v63, %v854_v37 }
 0x42c   :  { %v1206_v33 = vpop.f32.mrf.mxu0 }
 0x42d   :  { %v1282_v2 = vmax.f32 %v1205_v1, 0.0  ;;  %v1207_v0 = vadd.f32 %v1206_v33, %v854_v37  ;;  %v1275_v14 = vpop.f32.mrf.mxu1 }
 0x42e   :  { %v1276_v3 = vadd.f32 %v1275_v14, %v854_v37 }
 0x42f   :  { %1288 = vst [vmem:[%s2006_s6 + $0x10] sm:$0xff] %v1282_v2  ;;  %v1283_v4 = vmax.f32 %v1207_v0, 0.0  ;;  %v1277_v55 = vpop.f32.mrf.mxu1 }
 0x430   :  { %v1284_v59 = vmax.f32 %v1276_v3, 0.0  ;;  %v1278_v5 = vadd.f32 %v1277_v55, %v854_v37 }
 0x431   :  { %1289 = vst [vmem:[%s2006_s6 + $0x18] sm:$0xff] %v1283_v4 }
 0x432   :  { %1290 = vst [vmem:[%s2006_s6 + $0x20] sm:$0xff] %v1284_v59  ;;  %v1285_v6 = vmax.f32 %v1278_v5, 0.0 }
 0x434   :  { %1291 = vst.msk [vmem:[%s2006_s6 + $0x28] sm:$0xff] %vm688_vm11, %v1285_v6 }

</bundles_post_ra>
